<compile_context>
chip_gen: v7x
topology: tpu7x:2x2x1
jax: 0.10.0
libtpu: 0.0.40
codegen_flags: <defaults>
</compile_context>

<pallas_src>
import functools

import jax
import jax.numpy as jnp
from jax import lax
from jax.experimental import pallas as pl
from jax.experimental.pallas import tpu as pltpu

BN_EPS = 1e-5
NEG_SLOPE = 0.2
LANE = 128
_MIB = 1024 * 1024


def _round_up(x, m):
    return (x + m - 1) // m * m


def _physical_vmem_bytes():
    try:
        return int(pltpu.get_tpu_info().vmem_capacity_bytes)
    except Exception:
        return 64 * _MIB  # v7x-safe fallback


def _conv_stats_kernel(patches_ref, w_ref, *rest, m_total, tm, add_bias):
    """Pass 1: (TM,Kp)x(Kp,Cp) MXU matmul [+ bias] -> conv tile, accumulate BN sum / sumsq."""
    if add_bias:
        b_ref, conv_ref, stats_ref = rest
    else:
        conv_ref, stats_ref = rest

    i = pl.program_id(1)

    @pl.when(i == 0)
    def _():
        stats_ref[...] = jnp.zeros_like(stats_ref)

    conv = jnp.dot(patches_ref[...], w_ref[...], preferred_element_type=jnp.float32)
    if add_bias:
        conv = conv + b_ref[...]
    # Write the intermediate in conv_ref.dtype (bf16 on the production path) -> half the HBM
    # writeback; stats below still use the f32 register value.
    conv_ref[...] = conv.astype(conv_ref.dtype)

    # Mask rows beyond the true M (tile padding) out of the batch statistics.
    gi = pl.program_id(0) * pl.num_programs(1) + i
    row = gi * tm + lax.broadcasted_iota(jnp.int32, (tm, 1), 0)
    valid = (row < m_total).astype(jnp.float32)
    cm = conv * valid
    s = jnp.sum(cm, axis=0, keepdims=True)
    ss = jnp.sum(cm * cm, axis=0, keepdims=True)
    stats_ref[...] = stats_ref[...] + jnp.concatenate([s, ss], axis=0)[None]


def _bn_normalize_kernel(conv_ref, stats_ref, gamma_ref, beta_ref, out_ref, *, m_total):
    """Pass 2: finalize per-channel scale/shift, normalize the tile (one FMA per element)."""
    inv_m = 1.0 / m_total
    mean = stats_ref[0:1, :] * inv_m
    var = jnp.maximum(stats_ref[1:2, :] * inv_m - mean * mean, 0.0)  # biased (train) variance
    inv_std = lax.rsqrt(var + BN_EPS)                                 # EUP
    scale = gamma_ref[...] * inv_std
    shift = beta_ref[...] - mean * scale
    out_ref[...] = (conv_ref[...].astype(jnp.float32) * scale + shift).astype(out_ref.dtype)


def _im2col(x_nchw, kernel_size, stride, padding):
    """x: (N, C, H, W) -> patches (N*Ho*Wo, C*kh*kw), K ordered as (c, kh, kw)."""
    n, c, h, w = x_nchw.shape
    kh = kw = kernel_size
    ho = (h + 2 * padding - kh) // stride + 1
    wo = (w + 2 * padding - kw) // stride + 1
    xp = jnp.pad(x_nchw, ((0, 0), (0, 0), (padding, padding), (padding, padding)))
    taps = []
    for i in range(kh):
        for j in range(kw):
            taps.append(xp[:, :, i:i + stride * ho:stride, j:j + stride * wo:stride])
    patches = jnp.stack(taps, axis=0)                   # (kh*kw, N, C, Ho, Wo)
    patches = jnp.transpose(patches, (1, 3, 4, 2, 0))   # (N, Ho, Wo, C, kh*kw)
    patches = patches.reshape(n * ho * wo, c * kh * kw)
    return patches, ho, wo


@functools.partial(jax.jit, static_argnames=("kernel_size", "stride", "padding", "norm",
                                             "compute_dtype", "tm", "channels_last"))
def encoder_block(x_nchw, conv_w, conv_b, bn_gamma, bn_beta, *,
                  kernel_size=4, stride=2, padding=1, norm=True,
                  compute_dtype=jnp.bfloat16, tm=512, channels_last=False):
    n, c_in, h, w = x_nchw.shape
    c_out = conv_w.shape[0]
    out_dtype = x_nchw.dtype

    # LeakyReLU once per (un-duplicated) input element, in f32; XLA fuses it into the im2col
    # gather so it costs no extra HBM pass. Zero padding is unaffected (LeakyReLU(0) = 0).
    fx = jnp.where(x_nchw >= 0, x_nchw, x_nchw * NEG_SLOPE)

    # TODO(synk): move the im2col into the kernel (see header) to avoid the ~4x-expanded patch
    # matrix entirely; the bf16 cast below already halves its HBM cost vs. the prior version.
    patches, ho, wo = _im2col(fx.astype(compute_dtype), kernel_size, stride, padding)
    m, k = patches.shape

    # Lane-dense padding of K and Cout; M padded to a multiple of (row tile * core splits).
    kp = _round_up(k, LANE)
    cp = _round_up(c_out, LANE)
    tm_eff = max(8, min(tm, _round_up(m, 8)))
    grid_m = pl.cdiv(m, tm_eff)
    n_split = 2 if grid_m >= 2 else 1          # 2-TC stats split on v7x; serial elsewhere
    half = pl.cdiv(grid_m, n_split)
    grid_m = n_split * half
    m_pad = grid_m * tm_eff

    patches = jnp.pad(patches, ((0, m_pad - m), (0, kp - k)))
    w_mat = conv_w.reshape(c_out, c_in * kernel_size * kernel_size).T        # (K, Cout)
    w_mat = jnp.pad(w_mat, ((0, kp - k), (0, cp - c_out))).astype(compute_dtype)
    gamma_mat = jnp.pad(bn_gamma.reshape(1, c_out).astype(jnp.float32), ((0, 0), (0, cp - c_out)))
    beta_mat = jnp.pad(bn_beta.reshape(1, c_out).astype(jnp.float32), ((0, 0), (0, cp - c_out)))

    # With train-mode BatchNorm the conv bias cancels exactly; only apply it when norm=False.
    inter_dtype = compute_dtype if norm else out_dtype
    bias_args, bias_specs = [], []
    if not norm:
        b_mat = jnp.pad(conv_b.reshape(1, c_out).astype(jnp.float32), ((0, 0), (0, cp - c_out)))
        bias_args = [b_mat]
        bias_specs = [pl.BlockSpec((1, cp), lambda c, i: (0, 0))]

    # VMEM budget from the actual block sizes, capped against the current chip's physical VMEM
    # (128 MiB on v5e/v6e, 64 MiB on v7x; conservative fallback if the query fails).
    in_item = jnp.dtype(compute_dtype).itemsize
    inter_item = jnp.dtype(inter_dtype).itemsize
    out_item = jnp.dtype(out_dtype).itemsize
    p1_bytes = (2 * tm_eff * kp * in_item        # patch tile, double-buffered
                + 2 * tm_eff * cp * inter_item   # conv tile, double-buffered
                + 2 * kp * cp * in_item          # resident weights (default double-buffer)
                + 16 * cp * 4)                   # stats / bias
    p2_bytes = (2 * tm_eff * cp * inter_item     # conv tile in
                + 2 * tm_eff * cp * out_item     # normalized tile out
                + 16 * cp * 4)                   # stats / gamma / beta
    need = max(p1_bytes, p2_bytes)
    cap = max(32 * _MIB, min(100 * _MIB, int(0.85 * _physical_vmem_bytes())))
    vmem_limit = int(min(max(2 * need, 32 * _MIB), cap))

    # ---- Pass 1: conv tiles (+ bias if norm=False), per-core partial sum / sumsq. ----
    conv_full, stats_part = pl.pallas_call(
        functools.partial(_conv_stats_kernel, m_total=m, tm=tm_eff, add_bias=not norm),
        out_shape=(jax.ShapeDtypeStruct((m_pad, cp), inter_dtype),
                   jax.ShapeDtypeStruct((n_split, 2, cp), jnp.float32)),
        grid=(n_split, half),
        in_specs=[
            pl.BlockSpec((tm_eff, kp), lambda c, i: (c * half + i, 0)),  # patch tile (pipelined)
            pl.BlockSpec((kp, cp), lambda c, i: (0, 0)),                 # weights, resident
        ] + bias_specs,
        out_specs=(
            pl.BlockSpec((tm_eff, cp), lambda c, i: (c * half + i, 0)),  # conv tile -> HBM
            pl.BlockSpec((1, 2, cp), lambda c, i: (c, 0, 0)),            # per-split stats (resident)
        ),
        compiler_params=pltpu.CompilerParams(
            dimension_semantics=("parallel", "arbitrary"),  # stats accumulate along the M axis
            vmem_limit_bytes=vmem_limit),
    )(patches, w_mat, *bias_args)

    if not norm:
        out_mat = conv_full[:m, :c_out].reshape(n, ho, wo, c_out)
        return out_mat if channels_last else out_mat.transpose(0, 3, 1, 2)

    # Combine the per-core partial statistics (tiny (n_split, 2, Cp) array).
    stats = stats_part.sum(axis=0)

    # ---- Pass 2: normalize each conv tile with per-channel scale/shift. ----
    out_full = pl.pallas_call(
        functools.partial(_bn_normalize_kernel, m_total=m),
        out_shape=jax.ShapeDtypeStruct((m_pad, cp), out_dtype),
        grid=(grid_m,),
        in_specs=[
            pl.BlockSpec((tm_eff, cp), lambda i: (i, 0)),   # conv tile (bf16 on prod path)
            pl.BlockSpec((2, cp), lambda i: (0, 0)),        # stats, resident
            pl.BlockSpec((1, cp), lambda i: (0, 0)),        # gamma, resident
            pl.BlockSpec((1, cp), lambda i: (0, 0)),        # beta, resident
        ],
        out_specs=pl.BlockSpec((tm_eff, cp), lambda i: (i, 0)),
        compiler_params=pltpu.CompilerParams(
            dimension_semantics=("parallel",),
            vmem_limit_bytes=vmem_limit),
    )(conv_full, stats, gamma_mat, beta_mat)

    out_mat = out_full[:m, :c_out].reshape(n, ho, wo, c_out)
    if channels_last:
        return out_mat  # lane-dense NHWC: no extra output-sized HBM round trip
    # NCHW to match the PyTorch module; pass channels_last=True to skip this transpose.
    return out_mat.transpose(0, 3, 1, 2)


def _reference(x_nchw, conv_w, conv_b, bn_gamma, bn_beta):
    """Pure-JAX reference: leaky_relu -> conv (NCHW) -> train-mode batchnorm."""
    fx = jnp.where(x_nchw >= 0.0, x_nchw, NEG_SLOPE * x_nchw)
    conv = lax.conv_general_dilated(
        fx, conv_w, window_strides=(2, 2), padding=((1, 1), (1, 1)),
        dimension_numbers=("NCHW", "OIHW", "NCHW"))
    conv = conv + conv_b[None, :, None, None]
    mean = conv.mean(axis=(0, 2, 3), keepdims=True)
    var = ((conv - mean) ** 2).mean(axis=(0, 2, 3), keepdims=True)
    return (conv - mean) / jnp.sqrt(var + BN_EPS) * bn_gamma[None, :, None, None] \
        + bn_beta[None, :, None, None]


if __name__ == "__main__":
    key = jax.random.PRNGKey(0)
    kx, kwt, kb = jax.random.split(key, 3)

    N, C_IN, H, W = 2, 4, 16, 16
    C_OUT, KSIZE = 8, 4

    x = jax.random.normal(kx, (N, C_IN, H, W), dtype=jnp.float32)
    conv_w = jax.random.normal(kwt, (C_OUT, C_IN, KSIZE, KSIZE), dtype=jnp.float32) * 0.1
    conv_b = jax.random.normal(kb, (C_OUT,), dtype=jnp.float32) * 0.1
    bn_gamma = jnp.ones((C_OUT,), dtype=jnp.float32)   # PyTorch BatchNorm2d default init
    bn_beta = jnp.zeros((C_OUT,), dtype=jnp.float32)

    ref = _reference(x, conv_w, conv_b, bn_gamma, bn_beta)

    # f32 matmul + f32 intermediate path: strict numerical check against the reference.
    out_f32 = jax.block_until_ready(
        encoder_block(x, conv_w, conv_b, bn_gamma, bn_beta, compute_dtype=jnp.float32))
    assert out_f32.shape == (N, C_OUT, H // 2, W // 2), out_f32.shape
    assert jnp.allclose(out_f32, ref, atol=1e-4, rtol=1e-4), \
        float(jnp.max(jnp.abs(out_f32 - ref)))

    # bf16 matmul + bf16 conv-intermediate path (production default): looser check.
    out_bf16 = jax.block_until_ready(
        encoder_block(x, conv_w, conv_b, bn_gamma, bn_beta, compute_dtype=jnp.bfloat16))
    assert out_bf16.shape == (N, C_OUT, H // 2, W // 2), out_bf16.shape
    assert jnp.allclose(out_bf16, ref, atol=5e-2, rtol=5e-2), \
        float(jnp.max(jnp.abs(out_bf16 - ref)))

    # norm=False path (LeakyReLU -> conv + bias only, bias retained on this path).
    ref_conv = lax.conv_general_dilated(
        jnp.where(x >= 0.0, x, NEG_SLOPE * x), conv_w, window_strides=(2, 2),
        padding=((1, 1), (1, 1)), dimension_numbers=("NCHW", "OIHW", "NCHW")) \
        + conv_b[None, :, None, None]
    out_conv = jax.block_until_ready(
        encoder_block(x, conv_w, conv_b, bn_gamma, bn_beta, norm=False,
                      compute_dtype=jnp.float32))
    assert out_conv.shape == (N, C_OUT, H // 2, W // 2), out_conv.shape
    assert jnp.allclose(out_conv, ref_conv, atol=1e-4, rtol=1e-4), \
        float(jnp.max(jnp.abs(out_conv - ref_conv)))

    print("KERNEL_OK")
</pallas_src>

<mosaic_0001>
module attributes {stable_mosaic.version = 11 : i64} {
  func.func @_conv_stats_kernel(%arg0: i32, %arg1: i32, %arg2: memref<128x128xf32, #tpu.memory_space<vmem>>, %arg3: memref<128x128xf32, #tpu.memory_space<vmem>>, %arg4: memref<128x128xf32, #tpu.memory_space<vmem>>, %arg5: memref<1x2x128xf32, #tpu.memory_space<vmem>>) attributes {dimension_semantics = [#tpu.dimension_semantics<parallel>, #tpu.dimension_semantics<arbitrary>], iteration_bounds = array<i64: 1, 1>, scalar_prefetch = 0 : i64, scratch_operands = 0 : i64, tpu.core_type = #tpu.core_type<tc>, window_params = [{transform_indices = @transform_0, window_bounds = array<i64: 128, 128>}, {pipeline_mode = #tpu.pipeline_mode<synchronous>, transform_indices = @transform_1, window_bounds = array<i64: 128, 128>}, {transform_indices = @transform_2, window_bounds = array<i64: 128, 128>}, {transform_indices = @transform_3, window_bounds = array<i64: 1, 2, 128>}]} {
    %c0_i32 = arith.constant 0 : i32
    %0 = arith.cmpi eq, %arg1, %c0_i32 : i32
    %1 = arith.extui %0 : i1 to i32
    %c0_i32_0 = arith.constant 0 : i32
    %2 = arith.cmpi ne, %1, %c0_i32_0 : i32
    scf.if %2 {
      %cst_15 = arith.constant 0.000000e+00 : f32
      %29 = vector.broadcast %cst_15 : f32 to vector<1x2x128xf32>
      %c0_16 = arith.constant 0 : index
      %c0_17 = arith.constant 0 : index
      %c0_18 = arith.constant 0 : index
      %30 = vector.load %arg5[%c0_16, %c0_17, %c0_18] : memref<1x2x128xf32, #tpu.memory_space<vmem>>, vector<1x2x128xf32>
      tpu.vector_store %arg5[%c0_16, %c0_17, %c0_18], %29 {strides = array<i32>} : memref<1x2x128xf32, #tpu.memory_space<vmem>>, vector<1x2x128xf32>,
    } else {
    }
    %c0 = arith.constant 0 : index
    %c0_1 = arith.constant 0 : index
    %3 = vector.load %arg2[%c0, %c0_1] : memref<128x128xf32, #tpu.memory_space<vmem>>, vector<128x128xf32>
    %c0_2 = arith.constant 0 : index
    %c0_3 = arith.constant 0 : index
    %4 = vector.load %arg3[%c0_2, %c0_3] : memref<128x128xf32, #tpu.memory_space<vmem>>, vector<128x128xf32>
    %cst = arith.constant dense<0.000000e+00> : vector<128x128xf32>
    %5 = tpu.matmul %3, %4, %cst {dimension_numbers = #tpu.dot_dimension_numbers<[1], [0], [0], [1], [0, 0, 1, 1], [], []>} : vector<128x128xf32>, vector<128x128xf32>, vector<128x128xf32> -> vector<128x128xf32>
    %c0_4 = arith.constant 0 : index
    %c0_5 = arith.constant 0 : index
    %6 = vector.load %arg4[%c0_4, %c0_5] : memref<128x128xf32, #tpu.memory_space<vmem>>, vector<128x128xf32>
    tpu.vector_store %arg4[%c0_4, %c0_5], %5 {strides = array<i32>} : memref<128x128xf32, #tpu.memory_space<vmem>>, vector<128x128xf32>,
    %c1_i32 = arith.constant 1 : i32
    %7 = arith.muli %arg0, %c1_i32 : i32
    %8 = arith.addi %7, %arg1 : i32
    %c128_i32 = arith.constant 128 : i32
    %9 = arith.muli %8, %c128_i32 : i32
    %10 = tpu.iota {dimensions = array<i32: 0>} : vector<128x1xi32>
    %11 = vector.broadcast %9 : i32 to vector<128x1xi32>
    %12 = arith.addi %11, %10 : vector<128x1xi32>
    %c128_i32_6 = arith.constant 128 : i32
    %13 = vector.broadcast %c128_i32_6 : i32 to vector<128x1xi32>
    %14 = arith.cmpi slt, %12, %13 : vector<128x1xi32>
    %15 = arith.extui %14 : vector<128x1xi1> to vector<128x1xi32>
    %16 = arith.sitofp %15 : vector<128x1xi32> to vector<128x1xf32>
    %17 = vector.broadcast %16 : vector<128x1xf32> to vector<128x128xf32>
    %18 = arith.mulf %5, %17 : vector<128x128xf32>
    %cst_7 = arith.constant dense<0.000000e+00> : vector<128xf32>
    %19 = vector.multi_reduction <add>, %18, %cst_7 [0] : vector<128x128xf32> to vector<128xf32>
    %20 = vector.shape_cast %19 : vector<128xf32> to vector<1x128xf32>
    %21 = arith.mulf %18, %18 : vector<128x128xf32>
    %cst_8 = arith.constant dense<0.000000e+00> : vector<128xf32>
    %22 = vector.multi_reduction <add>, %21, %cst_8 [0] : vector<128x128xf32> to vector<128xf32>
    %23 = vector.shape_cast %22 : vector<128xf32> to vector<1x128xf32>
    %c0_9 = arith.constant 0 : index
    %c0_10 = arith.constant 0 : index
    %c0_11 = arith.constant 0 : index
    %24 = vector.load %arg5[%c0_9, %c0_10, %c0_11] : memref<1x2x128xf32, #tpu.memory_space<vmem>>, vector<1x2x128xf32>
    %25 = tpu.concatenate %20, %23 in 0 : vector<1x128xf32>, vector<1x128xf32> -> vector<2x128xf32>
    %26 = vector.shape_cast %25 : vector<2x128xf32> to vector<1x2x128xf32>
    %27 = arith.addf %24, %26 : vector<1x2x128xf32>
    %c0_12 = arith.constant 0 : index
    %c0_13 = arith.constant 0 : index
    %c0_14 = arith.constant 0 : index
    %28 = vector.load %arg5[%c0_12, %c0_13, %c0_14] : memref<1x2x128xf32, #tpu.memory_space<vmem>>, vector<1x2x128xf32>
    tpu.vector_store %arg5[%c0_12, %c0_13, %c0_14], %27 {strides = array<i32>} : memref<1x2x128xf32, #tpu.memory_space<vmem>>, vector<1x2x128xf32>,
    return
  }
  func.func @transform_0(%arg0: i32, %arg1: i32) -> (i32, i32) {
    %c1_i32 = arith.constant 1 : i32
    %0 = arith.muli %arg0, %c1_i32 : i32
    %1 = arith.addi %0, %arg1 : i32
    %c0_i32 = arith.constant 0 : i32
    %c0_i32_0 = arith.constant 0 : i32
    return %1, %c0_i32 : i32, i32
  }
  func.func @transform_1(%arg0: i32, %arg1: i32) -> (i32, i32) {
    %c0_i32 = arith.constant 0 : i32
    %c0_i32_0 = arith.constant 0 : i32
    %c0_i32_1 = arith.constant 0 : i32
    return %c0_i32, %c0_i32_0 : i32, i32
  }
  func.func @transform_2(%arg0: i32, %arg1: i32) -> (i32, i32) {
    %c1_i32 = arith.constant 1 : i32
    %0 = arith.muli %arg0, %c1_i32 : i32
    %1 = arith.addi %0, %arg1 : i32
    %c0_i32 = arith.constant 0 : i32
    %c0_i32_0 = arith.constant 0 : i32
    return %1, %c0_i32 : i32, i32
  }
  func.func @transform_3(%arg0: i32, %arg1: i32) -> (i32, i32, i32) {
    %c0_i32 = arith.constant 0 : i32
    %c0_i32_0 = arith.constant 0 : i32
    %c0_i32_1 = arith.constant 0 : i32
    return %arg0, %c0_i32, %c0_i32_0 : i32, i32, i32
  }
}

module attributes {stable_mosaic.version = 11 : i64} {
  func.func @_bn_normalize_kernel(%arg0: i32, %arg1: memref<128x128xf32, #tpu.memory_space<vmem>>, %arg2: memref<2x128xf32, #tpu.memory_space<vmem>>, %arg3: memref<1x128xf32, #tpu.memory_space<vmem>>, %arg4: memref<1x128xf32, #tpu.memory_space<vmem>>, %arg5: memref<128x128xf32, #tpu.memory_space<vmem>>) attributes {dimension_semantics = [#tpu.dimension_semantics<parallel>], iteration_bounds = array<i64: 1>, scalar_prefetch = 0 : i64, scratch_operands = 0 : i64, tpu.core_type = #tpu.core_type<tc>, window_params = [{transform_indices = @transform_0, window_bounds = array<i64: 128, 128>}, {pipeline_mode = #tpu.pipeline_mode<synchronous>, transform_indices = @transform_1, window_bounds = array<i64: 2, 128>}, {pipeline_mode = #tpu.pipeline_mode<synchronous>, transform_indices = @transform_2, window_bounds = array<i64: 1, 128>}, {pipeline_mode = #tpu.pipeline_mode<synchronous>, transform_indices = @transform_3, window_bounds = array<i64: 1, 128>}, {transform_indices = @transform_4, window_bounds = array<i64: 128, 128>}]} {
    %c0 = arith.constant 0 : index
    %c0_0 = arith.constant 0 : index
    %0 = vector.load %arg2[%c0, %c0_0] : memref<2x128xf32, #tpu.memory_space<vmem>>, vector<1x128xf32>
    %cst = arith.constant 7.812500e-03 : f32
    %1 = vector.broadcast %cst : f32 to vector<1x128xf32>
    %2 = arith.mulf %0, %1 : vector<1x128xf32>
    %c1 = arith.constant 1 : index
    %c0_1 = arith.constant 0 : index
    %3 = vector.load %arg2[%c1, %c0_1] : memref<2x128xf32, #tpu.memory_space<vmem>>, vector<1x128xf32>
    %cst_2 = arith.constant 7.812500e-03 : f32
    %4 = vector.broadcast %cst_2 : f32 to vector<1x128xf32>
    %5 = arith.mulf %3, %4 : vector<1x128xf32>
    %6 = arith.mulf %2, %2 : vector<1x128xf32>
    %7 = arith.subf %5, %6 : vector<1x128xf32>
    %cst_3 = arith.constant 0.000000e+00 : f32
    %8 = vector.broadcast %cst_3 : f32 to vector<1x128xf32>
    %9 = arith.maximumf %7, %8 : vector<1x128xf32>
    %cst_4 = arith.constant 9.99999974E-6 : f32
    %10 = vector.broadcast %cst_4 : f32 to vector<1x128xf32>
    %11 = arith.addf %9, %10 : vector<1x128xf32>
    %12 = math.rsqrt %11 : vector<1x128xf32>
    %c0_5 = arith.constant 0 : index
    %c0_6 = arith.constant 0 : index
    %13 = vector.load %arg3[%c0_5, %c0_6] : memref<1x128xf32, #tpu.memory_space<vmem>>, vector<1x128xf32>
    %14 = arith.mulf %13, %12 : vector<1x128xf32>
    %c0_7 = arith.constant 0 : index
    %c0_8 = arith.constant 0 : index
    %15 = vector.load %arg4[%c0_7, %c0_8] : memref<1x128xf32, #tpu.memory_space<vmem>>, vector<1x128xf32>
    %16 = arith.mulf %2, %14 : vector<1x128xf32>
    %17 = arith.subf %15, %16 : vector<1x128xf32>
    %c0_9 = arith.constant 0 : index
    %c0_10 = arith.constant 0 : index
    %18 = vector.load %arg1[%c0_9, %c0_10] : memref<128x128xf32, #tpu.memory_space<vmem>>, vector<128x128xf32>
    %19 = vector.broadcast %14 : vector<1x128xf32> to vector<128x128xf32>
    %20 = arith.mulf %18, %19 : vector<128x128xf32>
    %21 = vector.broadcast %17 : vector<1x128xf32> to vector<128x128xf32>
    %22 = arith.addf %20, %21 : vector<128x128xf32>
    %c0_11 = arith.constant 0 : index
    %c0_12 = arith.constant 0 : index
    %23 = vector.load %arg5[%c0_11, %c0_12] : memref<128x128xf32, #tpu.memory_space<vmem>>, vector<128x128xf32>
    tpu.vector_store %arg5[%c0_11, %c0_12], %22 {strides = array<i32>} : memref<128x128xf32, #tpu.memory_space<vmem>>, vector<128x128xf32>,
    return
  }
  func.func @transform_0(%arg0: i32) -> (i32, i32) {
    %c0_i32 = arith.constant 0 : i32
    %c0_i32_0 = arith.constant 0 : i32
    return %arg0, %c0_i32 : i32, i32
  }
  func.func @transform_1(%arg0: i32) -> (i32, i32) {
    %c0_i32 = arith.constant 0 : i32
    %c0_i32_0 = arith.constant 0 : i32
    %c0_i32_1 = arith.constant 0 : i32
    return %c0_i32, %c0_i32_0 : i32, i32
  }
  func.func @transform_2(%arg0: i32) -> (i32, i32) {
    %c0_i32 = arith.constant 0 : i32
    %c0_i32_0 = arith.constant 0 : i32
    %c0_i32_1 = arith.constant 0 : i32
    return %c0_i32, %c0_i32_0 : i32, i32
  }
  func.func @transform_3(%arg0: i32) -> (i32, i32) {
    %c0_i32 = arith.constant 0 : i32
    %c0_i32_0 = arith.constant 0 : i32
    %c0_i32_1 = arith.constant 0 : i32
    return %c0_i32, %c0_i32_0 : i32, i32
  }
  func.func @transform_4(%arg0: i32) -> (i32, i32) {
    %c0_i32 = arith.constant 0 : i32
    %c0_i32_0 = arith.constant 0 : i32
    return %arg0, %c0_i32 : i32, i32
  }
}

</mosaic_0001>

<bundles_post_ra>
// kernel: encoder_block.3
= control target key start
LH: loop header
LB: loop body
LE: loop exit
PB: predicated region body
PF: predicated region fallthrough
CT: control target
= control target key end

     0   :  { %v48_v8 = vlaneseq  ;;  %s246_s1 = inlined_call_operand.vmem [shape: f32[2,128], index: 1, kind: input, shape index: {}]   ;;  %s247_s2 = inlined_call_operand.vmem [shape: f32[1,128], index: 2, kind: input, shape index: {}]   ;;  %s248_s0 = inlined_call_operand.vmem [shape: f32[128,128], index: 0, kind: input, shape index: {}]   ;;  %s249_s3 = inlined_call_operand.vmem [shape: f32[1,128], index: 3, kind: input, shape index: {}]   ;;  %s250_s4 = inlined_call_operand.vmem [shape: f32[128,128], index: 4, kind: output, shape index: {}]  }
   0x1   :  { %v17_v0 = vld [vmem:[%s246_s1] sm:$0x1]  ;;  %v19_v1 = vld [vmem:[%s246_s1 + $0x1] sm:$0x1]  ;;  %v32_v16 = vld [vmem:[%s248_s0 + $0x8] sm:$0xff] }
   0x2   :  { %v18_v2 = vmul.f32 0.0078125, %v17_v0  ;;  %v20_v3 = vmul.f32 0.0078125, %v19_v1  ;;  %v49_v9 = vshrl.u32 %v48_v8, 7  ;;  %v26_v10 = vld [vmem:[%s247_s2] sm:$0x1]  ;;  %v33_v17 = vld [vmem:[%s248_s0 + $0x10] sm:$0xff] }
   0x3   :  { %v28_v14 = vld [vmem:[%s249_s3] sm:$0x1]  ;;  %v34_v18 = vld [vmem:[%s248_s0 + $0x18] sm:$0xff]  ;;  %v36_v22 = vld [vmem:[%s248_s0 + $0x28] sm:$0xff] }
   0x4   :  { %v21_v4 = vmul.f32 %v18_v2, %v18_v2  ;;  %v50_v11 = vsub.s32 0, %v49_v9  ;;  %v31_v15 = vld [vmem:[%s248_s0] sm:$0xff]  ;;  %v37_v23 = vld [vmem:[%s248_s0 + $0x30] sm:$0xff]  ;;  %v38_v24 = vld [vmem:[%s248_s0 + $0x38] sm:$0xff] }
   0x5   :  { %v35_v19 = vld [vmem:[%s248_s0 + $0x20] sm:$0xff]  ;;  %v40_v26 = vld [vmem:[%s248_s0 + $0x48] sm:$0xff]  ;;  %v41_v27 = vld [vmem:[%s248_s0 + $0x50] sm:$0xff] }
   0x6   :  { %v22_v5 = vsub.f32 %v20_v3, %v21_v4  ;;  %v39_v25 = vld [vmem:[%s248_s0 + $0x40] sm:$0xff]  ;;  %v42_v32 = vld [vmem:[%s248_s0 + $0x58] sm:$0xff]  ;;  %v44_v34 = vld [vmem:[%s248_s0 + $0x68] sm:$0xff] }
   0x7   :  { %v43_v33 = vld [vmem:[%s248_s0 + $0x60] sm:$0xff]  ;;  %v45_v51 = vld [vmem:[%s248_s0 + $0x70] sm:$0xff]  ;;  %v46_v52 = vld [vmem:[%s248_s0 + $0x78] sm:$0xff] }
   0x8   :  { %v23_v6 = vmax.f32 %v22_v5, 0.0 }
   0xa   :  { %v24_v7 = vadd.f32 1e-05, %v23_v6 }
   0xc   :  { %111 = vrsqrt.f32 %v24_v7 }
  0x16   :  { %v112_v12 = vpop.eup %111 }
  0x17   :  { %v27_v13 = vmul.f32 %v112_v12, %v26_v10 }
  0x19   :  { %v29_v20 = vmul.f32 %v27_v13, %v18_v2  ;;  %v51_v21 = vrot.slane %v27_v13, %v50_v11 }
  0x1b   :  { %v30_v28 = vsub.f32 %v28_v14, %v29_v20  ;;  %v53_v29 = vmul.f32 %v51_v21, %v31_v15  ;;  %v54_v30 = vmul.f32 %v51_v21, %v32_v16  ;;  %v55_v31 = vmul.f32 %v51_v21, %v33_v17 }
  0x1c   :  { %v56_v35 = vmul.f32 %v51_v21, %v34_v18  ;;  %v57_v36 = vmul.f32 %v51_v21, %v35_v19  ;;  %v58_v37 = vmul.f32 %v51_v21, %v36_v22  ;;  %v59_v38 = vmul.f32 %v51_v21, %v37_v23 }
  0x1d   :  { %v73_v39 = vrot.slane %v30_v28, %v50_v11  ;;  %v60_v40 = vmul.f32 %v51_v21, %v38_v24  ;;  %v61_v41 = vmul.f32 %v51_v21, %v39_v25  ;;  %v62_v42 = vmul.f32 %v51_v21, %v40_v26 }
  0x1e   :  { %v63_v43 = vmul.f32 %v51_v21, %v41_v27  ;;  %v64_v44 = vmul.f32 %v51_v21, %v42_v32  ;;  %v65_v45 = vmul.f32 %v51_v21, %v43_v33  ;;  %v66_v46 = vmul.f32 %v51_v21, %v44_v34 }
  0x1f   :  { %v75_v47 = vadd.f32 %v73_v39, %v53_v29  ;;  %v76_v48 = vadd.f32 %v73_v39, %v54_v30  ;;  %v77_v49 = vadd.f32 %v73_v39, %v55_v31  ;;  %v78_v50 = vadd.f32 %v73_v39, %v56_v35 }
  0x20   :  { %v79_v53 = vadd.f32 %v73_v39, %v57_v36  ;;  %v80_v54 = vadd.f32 %v73_v39, %v58_v37  ;;  %v81_v55 = vadd.f32 %v73_v39, %v59_v38  ;;  %v82_v56 = vadd.f32 %v73_v39, %v60_v40 }
  0x21   :  { %91 = vst [vmem:[%s250_s4] sm:$0xff] %v75_v47  ;;  %92 = vst [vmem:[%s250_s4 + $0x8] sm:$0xff] %v76_v48  ;;  %v83_v57 = vadd.f32 %v73_v39, %v61_v41  ;;  %v84_v58 = vadd.f32 %v73_v39, %v62_v42  ;;  %v85_v59 = vadd.f32 %v73_v39, %v63_v43 }
  0x22   :  { %93 = vst [vmem:[%s250_s4 + $0x10] sm:$0xff] %v77_v49  ;;  %94 = vst [vmem:[%s250_s4 + $0x18] sm:$0xff] %v78_v50  ;;  %v86_v60 = vadd.f32 %v73_v39, %v64_v44  ;;  %v87_v61 = vadd.f32 %v73_v39, %v65_v45  ;;  %v88_v62 = vadd.f32 %v73_v39, %v66_v46 }
  0x23   :  { %95 = vst [vmem:[%s250_s4 + $0x20] sm:$0xff] %v79_v53  ;;  %96 = vst [vmem:[%s250_s4 + $0x28] sm:$0xff] %v80_v54  ;;  %v67_v63 = vmul.f32 %v51_v21, %v45_v51  ;;  %v68_v0 = vmul.f32 %v51_v21, %v46_v52 }
  0x24   :  { %97 = vst [vmem:[%s250_s4 + $0x30] sm:$0xff] %v81_v55  ;;  %98 = vst [vmem:[%s250_s4 + $0x38] sm:$0xff] %v82_v56 }
  0x25   :  { %99 = vst [vmem:[%s250_s4 + $0x40] sm:$0xff] %v83_v57  ;;  %100 = vst [vmem:[%s250_s4 + $0x48] sm:$0xff] %v84_v58  ;;  %v89_v1 = vadd.f32 %v73_v39, %v67_v63  ;;  %v90_v2 = vadd.f32 %v73_v39, %v68_v0 }
  0x26   :  { %101 = vst [vmem:[%s250_s4 + $0x50] sm:$0xff] %v85_v59  ;;  %102 = vst [vmem:[%s250_s4 + $0x58] sm:$0xff] %v86_v60 }
  0x27   :  { %103 = vst [vmem:[%s250_s4 + $0x60] sm:$0xff] %v87_v61  ;;  %104 = vst [vmem:[%s250_s4 + $0x68] sm:$0xff] %v88_v62 }
  0x28   :  { %105 = vst [vmem:[%s250_s4 + $0x70] sm:$0xff] %v89_v1  ;;  %106 = vst [vmem:[%s250_s4 + $0x78] sm:$0xff] %v90_v2 }

// kernel: encoder_block.2
= control target key start
LH: loop header
LB: loop body
LE: loop exit
PB: predicated region body
PF: predicated region fallthrough
CT: control target
= control target key end

     0   :  { %v583_v40 = vmov 0.0   ;;  %vm406_vm0 = vcmask 1040384   ;;  %s757_s1 = inlined_call_operand.vmem [shape: f32[128,128], index: 1, kind: input, shape index: {}]   ;;  %s758_s0 = inlined_call_operand.vmem [shape: f32[128,128], index: 0, kind: input, shape index: {}]   ;;  %s759_s3 = inlined_call_operand.vmem [shape: f32[1,2,128], index: 3, kind: output, shape index: {1}]   ;;  %s760_s2 = inlined_call_operand.vmem [shape: f32[128,128], index: 2, kind: output, shape index: {0}]  }
   0x1   :  { %v70_v0 = vld [vmem:[%s757_s1] sm:$0xff]  ;;  %v71_v1 = vld [vmem:[%s757_s1 + $0x8] sm:$0xff]  ;;  %v72_v2 = vld [vmem:[%s757_s1 + $0x10] sm:$0xff]  ;;  %53 = vst [vmem:[%s759_s3] sm:$0x3] %v583_v40 }
   0x2   :  { %v534_v3 = vpack.c.bf16 %v71_v1, %v70_v0  ;;  %v73_v4 = vld [vmem:[%s757_s1 + $0x18] sm:$0xff]  ;;  %v74_v6 = vld [vmem:[%s757_s1 + $0x20] sm:$0xff]  ;;  %v75_v7 = vld [vmem:[%s757_s1 + $0x28] sm:$0xff] }
   0x3   :  { %v538_v5 = vpack.c.bf16 %v73_v4, %v72_v2  ;;  %v542_v8 = vpack.c.bf16 %v75_v7, %v74_v6  ;;  %v54_v9 = vld [vmem:[%s758_s0] sm:$0xff]  ;;  %v76_v10 = vld [vmem:[%s757_s1 + $0x30] sm:$0xff]  ;;  %v77_v11 = vld [vmem:[%s757_s1 + $0x38] sm:$0xff] }
   0x4   :  { %535 = vmatprep.subr.bf16.mxu0 %v534_v3  ;;  %566 = vmatprep.subr.bf16.mxu1 %v534_v3  ;;  %v62_v12 = vld [vmem:[%s758_s0 + $0x40] sm:$0xff]  ;;  %v546_v13 = vpack.c.bf16 %v77_v11, %v76_v10  ;;  %v79_v15 = vld [vmem:[%s757_s1 + $0x48] sm:$0xff]  ;;  %v80_v17 = vld [vmem:[%s757_s1 + $0x50] sm:$0xff] }
   0x5   :  { %537 = vmatpush3.bf16.msra.mxu0 %v534_v3  ;;  %574 = vmatpush3.bf16.msra.mxu1 %v534_v3  ;;  %v78_v14 = vld [vmem:[%s757_s1 + $0x40] sm:$0xff]  ;;  %v81_v18 = vld [vmem:[%s757_s1 + $0x58] sm:$0xff]  ;;  %v83_v21 = vld [vmem:[%s757_s1 + $0x68] sm:$0xff] }
   0x6   :  { %539 = vmatprep.subr.bf16.mxu0 %v538_v5  ;;  %567 = vmatprep.subr.bf16.mxu1 %v538_v5  ;;  %v550_v16 = vpack.c.bf16 %v79_v15, %v78_v14  ;;  %v554_v19 = vpack.c.bf16 %v81_v18, %v80_v17  ;;  %v82_v20 = vld [vmem:[%s757_s1 + $0x60] sm:$0xff]  ;;  %v84_v23 = vld [vmem:[%s757_s1 + $0x70] sm:$0xff]  ;;  %v85_v24 = vld [vmem:[%s757_s1 + $0x78] sm:$0xff] }
   0x7   :  { %510 = vmatprep.mubr.f32.mxu0 %v54_v9  ;;  %522 = vmatprep.mubr.f32.mxu1 %v62_v12  ;;  %v558_v22 = vpack.c.bf16 %v83_v21, %v82_v20  ;;  %v562_v25 = vpack.c.bf16 %v85_v24, %v84_v23  ;;  %v55_v26 = vld [vmem:[%s758_s0 + $0x8] sm:$0xff]  ;;  %v56_v28 = vld [vmem:[%s758_s0 + $0x10] sm:$0xff]  ;;  %v57_v30 = vld [vmem:[%s758_s0 + $0x18] sm:$0xff] }
   0x8   :  { %v63_v27 = vld [vmem:[%s758_s0 + $0x48] sm:$0xff]  ;;  %v64_v29 = vld [vmem:[%s758_s0 + $0x50] sm:$0xff]  ;;  %v65_v31 = vld [vmem:[%s758_s0 + $0x58] sm:$0xff] }
   0x9   :  { %541 = vmatpush3.bf16.msra.mxu0 %v538_v5  ;;  %575 = vmatpush3.bf16.msra.mxu1 %v538_v5  ;;  %v58_v32 = vld [vmem:[%s758_s0 + $0x20] sm:$0xff]  ;;  %v59_v34 = vld [vmem:[%s758_s0 + $0x28] sm:$0xff]  ;;  %v60_v36 = vld [vmem:[%s758_s0 + $0x30] sm:$0xff] }
   0xa   :  { %543 = vmatprep.subr.bf16.mxu0 %v542_v8  ;;  %568 = vmatprep.subr.bf16.mxu1 %v542_v8  ;;  %v66_v33 = vld [vmem:[%s758_s0 + $0x60] sm:$0xff]  ;;  %v67_v35 = vld [vmem:[%s758_s0 + $0x68] sm:$0xff]  ;;  %v68_v37 = vld [vmem:[%s758_s0 + $0x70] sm:$0xff] }
   0xb   :  { %v61_v38 = vld [vmem:[%s758_s0 + $0x38] sm:$0xff] }
   0xc   :  { %v69_v39 = vld [vmem:[%s758_s0 + $0x78] sm:$0xff] }
   0xd   :  { %545 = vmatpush3.bf16.msra.mxu0 %v542_v8  ;;  %576 = vmatpush3.bf16.msra.mxu1 %v542_v8 }
   0xe   :  { %547 = vmatprep.subr.bf16.mxu0 %v546_v13  ;;  %569 = vmatprep.subr.bf16.mxu1 %v546_v13 }
  0x11   :  { %549 = vmatpush3.bf16.msra.mxu0 %v546_v13  ;;  %577 = vmatpush3.bf16.msra.mxu1 %v546_v13 }
  0x12   :  { %551 = vmatprep.subr.bf16.mxu0 %v550_v16  ;;  %570 = vmatprep.subr.bf16.mxu1 %v550_v16 }
  0x15   :  { %553 = vmatpush3.bf16.msra.mxu0 %v550_v16  ;;  %578 = vmatpush3.bf16.msra.mxu1 %v550_v16 }
  0x16   :  { %555 = vmatprep.subr.bf16.mxu0 %v554_v19  ;;  %571 = vmatprep.subr.bf16.mxu1 %v554_v19 }
  0x19   :  { %557 = vmatpush3.bf16.msra.mxu0 %v554_v19  ;;  %579 = vmatpush3.bf16.msra.mxu1 %v554_v19 }
  0x1a   :  { %559 = vmatprep.subr.bf16.mxu0 %v558_v22  ;;  %572 = vmatprep.subr.bf16.mxu1 %v558_v22 }
  0x1d   :  { %561 = vmatpush3.bf16.msra.mxu0 %v558_v22  ;;  %580 = vmatpush3.bf16.msra.mxu1 %v558_v22 }
  0x1e   :  { %563 = vmatprep.subr.bf16.mxu0 %v562_v25  ;;  %573 = vmatprep.subr.bf16.mxu1 %v562_v25 }
  0x21   :  { %565 = vmatpush3.bf16.msra.mxu0 %v562_v25  ;;  %581 = vmatpush3.bf16.msra.mxu1 %v562_v25 }
  0x24   :  { %511 = vmatmul.mubr.f32.vlgmr.msra.gmra.mrb[0].mxu0 %v55_v26  ;;  %523 = vmatmul.mubr.f32.vlgmr.msra.gmra.mrb[0].mxu1 %v63_v27 }
  0x25   :  { %513 = vmatprep.mubr.f32.mxu0 %v56_v28  ;;  %525 = vmatprep.mubr.f32.mxu1 %v64_v29 }
  0x28   :  { %514 = vmatmul.mubr.f32.gmra.mrb[2].mxu0 %v57_v30  ;;  %526 = vmatmul.mubr.f32.gmra.mrb[2].mxu1 %v65_v31 }
  0x29   :  { %516 = vmatprep.mubr.f32.mxu0 %v58_v32  ;;  %528 = vmatprep.mubr.f32.mxu1 %v66_v33 }
  0x2c   :  { %517 = vmatmul.mubr.f32.gmra.mrb[4].mxu0 %v59_v34  ;;  %529 = vmatmul.mubr.f32.gmra.mrb[4].mxu1 %v67_v35 }
  0x2d   :  { %519 = vmatprep.mubr.f32.mxu0 %v60_v36  ;;  %531 = vmatprep.mubr.f32.mxu1 %v68_v37 }
  0x30   :  { %520 = vmatmul.mubr.f32.gmra.mrb[6].mxu0 %v61_v38  ;;  %532 = vmatmul.mubr.f32.gmra.mrb[6].mxu1 %v69_v39 }
  0xf7   :  { %v512_v41 = vpop.f32.mrb[0].mxu0  ;;  %v524_v42 = vpop.f32.mrb[0].mxu1 }
  0xf8   :  { %232 = vst [vmem:[%s760_s2 + $0x8] sm:$0xff] %v512_v41  ;;  %v369_v43 = vmul.f32 %v512_v41, %v512_v41  ;;  %v152_v44 = vpop.f32.mrb[1].mxu0  ;;  %240 = vst [vmem:[%s760_s2 + $0x48] sm:$0xff] %v524_v42  ;;  %v192_v45 = vpop.f32.mrb[1].mxu1  ;;  %v377_v17 = vmul.f32 %v524_v42, %v524_v42 }
  0xf9   :  { %231 = vst [vmem:[%s760_s2] sm:$0xff] %v152_v44  ;;  %v347_v46 = vadd.f32 %v512_v41, %v152_v44  ;;  %v368_v47 = vmul.f32 %v152_v44, %v152_v44  ;;  %239 = vst [vmem:[%s760_s2 + $0x40] sm:$0xff] %v192_v45  ;;  %v376_v14 = vmul.f32 %v192_v45, %v192_v45 }
  0xfb   :  { %v384_v48 = vadd.f32 %v369_v43, %v368_v47  ;;  %v515_v49 = vpop.f32.mrb[2].mxu0  ;;  %v527_v50 = vpop.f32.mrb[2].mxu1 }
  0xfc   :  { %234 = vst [vmem:[%s760_s2 + $0x18] sm:$0xff] %v515_v49  ;;  %v162_v51 = vpop.f32.mrb[3].mxu0  ;;  %242 = vst [vmem:[%s760_s2 + $0x58] sm:$0xff] %v527_v50  ;;  %v202_v52 = vpop.f32.mrb[3].mxu1  ;;  %v371_v55 = vmul.f32 %v515_v49, %v515_v49  ;;  %v379_v23 = vmul.f32 %v527_v50, %v527_v50 }
  0xfd   :  { %233 = vst [vmem:[%s760_s2 + $0x10] sm:$0xff] %v162_v51  ;;  %v348_v53 = vadd.f32 %v347_v46, %v162_v51  ;;  %v370_v54 = vmul.f32 %v162_v51, %v162_v51  ;;  %241 = vst [vmem:[%s760_s2 + $0x50] sm:$0xff] %v202_v52  ;;  %v378_v20 = vmul.f32 %v202_v52, %v202_v52  ;;  %v405_v51 = vld [vmem:[%s759_s3] sm:$0x3] }
  0xff   :  { %v385_v56 = vadd.f32 %v384_v48, %v370_v54  ;;  %v518_v57 = vpop.f32.mrb[4].mxu0  ;;  %v349_v58 = vadd.f32 %v515_v49, %v348_v53  ;;  %v530_v59 = vpop.f32.mrb[4].mxu1 }
 0x100   :  { %236 = vst [vmem:[%s760_s2 + $0x28] sm:$0xff] %v518_v57  ;;  %v172_v60 = vpop.f32.mrb[5].mxu0  ;;  %244 = vst [vmem:[%s760_s2 + $0x68] sm:$0xff] %v530_v59  ;;  %v212_v61 = vpop.f32.mrb[5].mxu1  ;;  %v373_v1 = vmul.f32 %v518_v57, %v518_v57  ;;  %v381_v29 = vmul.f32 %v530_v59, %v530_v59 }
 0x101   :  { %235 = vst [vmem:[%s760_s2 + $0x20] sm:$0xff] %v172_v60  ;;  %v350_v62 = vadd.f32 %v349_v58, %v172_v60  ;;  %v372_v63 = vmul.f32 %v172_v60, %v172_v60  ;;  %v386_v0 = vadd.f32 %v385_v56, %v371_v55  ;;  %243 = vst [vmem:[%s760_s2 + $0x60] sm:$0xff] %v212_v61 }
 0x102   :  { %v380_v26 = vmul.f32 %v212_v61, %v212_v61 }
 0x103   :  { %v387_v2 = vadd.f32 %v386_v0, %v372_v63  ;;  %v521_v3 = vpop.f32.mrb[6].mxu0  ;;  %v351_v4 = vadd.f32 %v518_v57, %v350_v62  ;;  %v533_v5 = vpop.f32.mrb[6].mxu1 }
 0x104   :  { %238 = vst [vmem:[%s760_s2 + $0x38] sm:$0xff] %v521_v3  ;;  %v182_v6 = vpop.f32.mrb[7].mxu0  ;;  %246 = vst [vmem:[%s760_s2 + $0x78] sm:$0xff] %v533_v5  ;;  %v222_v7 = vpop.f32.mrb[7].mxu1  ;;  %v375_v11 = vmul.f32 %v521_v3, %v521_v3  ;;  %v383_v35 = vmul.f32 %v533_v5, %v533_v5 }
 0x105   :  { %237 = vst [vmem:[%s760_s2 + $0x30] sm:$0xff] %v182_v6  ;;  %v352_v8 = vadd.f32 %v351_v4, %v182_v6  ;;  %v374_v9 = vmul.f32 %v182_v6, %v182_v6  ;;  %v388_v10 = vadd.f32 %v387_v2, %v373_v1  ;;  %245 = vst [vmem:[%s760_s2 + $0x70] sm:$0xff] %v222_v7 }
 0x106   :  { %v382_v32 = vmul.f32 %v222_v7, %v222_v7 }
 0x107   :  { %v353_v12 = vadd.f32 %v521_v3, %v352_v8  ;;  %v389_v13 = vadd.f32 %v388_v10, %v374_v9 }
 0x109   :  { %v390_v15 = vadd.f32 %v389_v13, %v375_v11  ;;  %v354_v16 = vadd.f32 %v353_v12, %v192_v45 }
 0x10b   :  { %v391_v18 = vadd.f32 %v390_v15, %v376_v14  ;;  %v355_v19 = vadd.f32 %v524_v42, %v354_v16 }
 0x10d   :  { %v356_v21 = vadd.f32 %v355_v19, %v202_v52  ;;  %v392_v22 = vadd.f32 %v391_v18, %v377_v17 }
 0x10f   :  { %v393_v24 = vadd.f32 %v392_v22, %v378_v20  ;;  %v357_v25 = vadd.f32 %v527_v50, %v356_v21 }
 0x111   :  { %v358_v27 = vadd.f32 %v357_v25, %v212_v61  ;;  %v394_v28 = vadd.f32 %v393_v24, %v379_v23 }
 0x113   :  { %v395_v30 = vadd.f32 %v394_v28, %v380_v26  ;;  %v359_v31 = vadd.f32 %v530_v59, %v358_v27 }
 0x115   :  { %v360_v33 = vadd.f32 %v359_v31, %v222_v7  ;;  %v396_v34 = vadd.f32 %v395_v30, %v381_v29 }
 0x117   :  { %v361_v36 = vadd.f32 %v533_v5, %v360_v33  ;;  %v397_v37 = vadd.f32 %v396_v34, %v382_v32 }
 0x119   :  { %v362_v38 = vrot.slane %v361_v36, 4  ;;  %v398_v39 = vadd.f32 %v397_v37, %v383_v35 }
 0x11b   :  { %v363_v40 = vadd.f32 %v362_v38, %v361_v36  ;;  %v399_v41 = vrot.slane %v398_v39, 4 }
 0x11d   :  { %v364_v42 = vrot.slane %v363_v40, 2  ;;  %v400_v43 = vadd.f32 %v399_v41, %v398_v39 }
 0x11f   :  { %v365_v44 = vadd.f32 %v364_v42, %v363_v40  ;;  %v401_v45 = vrot.slane %v400_v43, 2 }
 0x121   :  { %v366_v46 = vrot.slane %v365_v44, 1  ;;  %v402_v47 = vadd.f32 %v401_v45, %v400_v43 }
 0x123   :  { %v403_v48 = vrot.slane %v402_v47, 1  ;;  %v367_v49 = vadd.f32 %v366_v46, %v365_v44 }
 0x125   :  { %v404_v50 = vadd.f32 %v403_v48, %v402_v47 }
 0x127   :  { %v407_v52 = vsel %vm406_vm0, %v367_v49, %v404_v50 }
 0x128   :  { %v408_v53 = vadd.f32 %v407_v52, %v405_v51 }
 0x12a   :  { %409 = vst [vmem:[%s759_s3] sm:$0x3] %v408_v53 }

</bundles_post_ra>
